<compile_context>
chip_gen: v7x
topology: tpu7x:2x2x1
jax: 0.10.0
libtpu: 0.0.40
codegen_flags: <defaults>
</compile_context>

<pallas_src>
import math
from functools import partial

import jax
import jax.numpy as jnp
from jax import lax
from jax.experimental import pallas as pl
from jax.experimental.pallas import tpu as pltpu


def _round_up(n, m):
    return ((n + m - 1) // m) * m


def _erf_gelu(x):
    # Matches torch.nn.functional.gelu default (exact, erf-based).
    return 0.5 * x * (1.0 + lax.erf(x * (1.0 / math.sqrt(2.0))))


def adapter_kernel(x_ref, w1_ref, b1_ref, w2_ref, b2_ref, o_ref):
    x = x_ref[...]                                              # (tm, E_pad), storage dtype
    # Down projection on the MXU with f32 accumulation (no operand upcast).
    h = jnp.dot(x, w1_ref[...], preferred_element_type=jnp.float32)
    h = h + b1_ref[...].astype(jnp.float32)
    h = _erf_gelu(h)                                            # (tm, D_pad), f32
    # Up projection; feed the weight storage dtype back to the MXU.
    y = jnp.dot(h.astype(w2_ref.dtype), w2_ref[...],
                preferred_element_type=jnp.float32)
    y = y + b2_ref[...].astype(jnp.float32)
    o_ref[...] = (y + x.astype(jnp.float32)).astype(o_ref.dtype)  # residual add


def _choose_tm(M, E_pad, D_pad, itemsize, tm_target=256,
               vmem_budget_bytes=24 << 20):
    """Row tile: multiple of 8, <= tm_target, clamped to a conservative VMEM
    budget (safe under v7x's 32 MiB scoped default)."""
    tm = min(tm_target, _round_up(M, 8))
    weights = (E_pad * D_pad * 2 + D_pad + E_pad) * itemsize      # single-buffered
    def per_tile(t):
        # x + out tiles double-buffered, plus f32 intermediates headroom.
        return 2 * 2 * t * E_pad * itemsize + t * (D_pad + E_pad) * 4
    while tm > 8 and weights + per_tile(tm) > vmem_budget_bytes:
        tm = max(8, _round_up(tm // 2, 8))
    return tm


def adapter_forward(x, w1, b1, w2, b2, *, tm_target=256):
    """x: (B, S, E). w1: (E, D), b1: (D,), w2: (D, E), b2: (E,)."""
    B, S, E = x.shape
    D = w1.shape[1]
    M = B * S

    # Lane-dense padding of the feature dims.
    E_pad = _round_up(E, 128)
    D_pad = _round_up(D, 128)

    itemsize = jnp.dtype(x.dtype).itemsize
    tm = _choose_tm(M, E_pad, D_pad, itemsize, tm_target=tm_target)
    M_pad = _round_up(M, tm)

    x2 = jnp.pad(x.reshape(M, E), ((0, M_pad - M), (0, E_pad - E)))
    w1p = jnp.pad(w1, ((0, E_pad - E), (0, D_pad - D)))
    b1p = jnp.pad(b1, (0, D_pad - D)).reshape(1, D_pad)
    w2p = jnp.pad(w2, ((0, D_pad - D), (0, E_pad - E)))
    b2p = jnp.pad(b2, (0, E_pad - E)).reshape(1, E_pad)

    grid = (M_pad // tm,)

    cost = pl.CostEstimate(
        flops=4 * M_pad * E_pad * D_pad,
        transcendentals=M_pad * D_pad,
        bytes_accessed=(x2.size * x2.dtype.itemsize
                        + w1p.size * w1p.dtype.itemsize
                        + b1p.size * b1p.dtype.itemsize
                        + w2p.size * w2p.dtype.itemsize
                        + b2p.size * b2p.dtype.itemsize
                        + M_pad * E_pad * itemsize),
    )

    def _call(single_buffer_weights):
        if single_buffer_weights:
            const_spec = partial(pl.BlockSpec, pipeline_mode=pl.Buffered(1))
        else:
            const_spec = pl.BlockSpec
        return pl.pallas_call(
            adapter_kernel,
            out_shape=jax.ShapeDtypeStruct((M_pad, E_pad), x.dtype),
            grid_spec=pltpu.PrefetchScalarGridSpec(
                num_scalar_prefetch=0,
                grid=grid,
                in_specs=[
                    pl.BlockSpec((tm, E_pad), lambda i: (i, 0)),       # x row tile
                    const_spec((E_pad, D_pad), lambda i: (0, 0)),      # W1 (in, out)
                    const_spec((1, D_pad), lambda i: (0, 0)),          # b1
                    const_spec((D_pad, E_pad), lambda i: (0, 0)),      # W2 (in, out)
                    const_spec((1, E_pad), lambda i: (0, 0)),          # b2
                ],
                out_specs=pl.BlockSpec((tm, E_pad), lambda i: (i, 0)),
            ),
            compiler_params=pltpu.CompilerParams(
                dimension_semantics=("parallel",)),
            cost_estimate=cost,
        )(x2, w1p, b1p, w2p, b2p)

    try:
        out = _call(True)
    except Exception:
        # Fallback if this JAX build rejects single-buffered pipeline_mode.
        out = _call(False)

    return out[:M, :E].reshape(B, S, E)


def reference_forward(x, w1, b1, w2, b2):
    h = jnp.einsum("bse,ed->bsd", x, w1) + b1
    h = _erf_gelu(h)
    y = jnp.einsum("bsd,de->bse", h, w2) + b2
    return y + x


if __name__ == "__main__":
    # Module config: down_dim = 32 (fixed), n_embd = 64 (small demo hidden).
    B, S, E, D = 2, 8, 64, 32

    key = jax.random.PRNGKey(0)
    kx, k1, kb1, k2, kb2 = jax.random.split(key, 5)

    x = jax.random.normal(kx, (B, S, E), dtype=jnp.float32)

    # PyTorch Linear stores (out, in); here weights are kept pre-transposed (in, out).
    w1 = jax.random.normal(k1, (E, D), dtype=jnp.float32) * (1.0 / math.sqrt(E))
    b1 = jax.random.normal(kb1, (D,), dtype=jnp.float32) * 0.02
    w2 = jax.random.normal(k2, (D, E), dtype=jnp.float32) * (1.0 / math.sqrt(D))
    b2 = jax.random.normal(kb2, (E,), dtype=jnp.float32) * 0.02

    out = adapter_forward(x, w1, b1, w2, b2)
    out = jax.block_until_ready(out)
    ref = reference_forward(x, w1, b1, w2, b2)
    assert out.shape == (B, S, E)
    assert jnp.allclose(out, ref, atol=1e-5, rtol=1e-5), "mismatch vs reference (small)"

    # Second check: enough tokens to exercise a multi-step grid (row tiling,
    # ragged M padding, lane padding) on the same weights.
    B2, S2 = 4, 150                      # M = 600 -> tm = 256, grid = 3 (ragged)
    x_big = jax.random.normal(jax.random.PRNGKey(1), (B2, S2, E), dtype=jnp.float32)
    out_big = jax.block_until_ready(adapter_forward(x_big, w1, b1, w2, b2))
    ref_big = reference_forward(x_big, w1, b1, w2, b2)
    assert out_big.shape == (B2, S2, E)
    assert jnp.allclose(out_big, ref_big, atol=1e-4, rtol=1e-4), "mismatch vs reference (big)"

    print("KERNEL_OK")
</pallas_src>

<mosaic_0001>
module attributes {stable_mosaic.version = 11 : i64} {
  func.func @adapter_kernel(%arg0: i32, %arg1: memref<16x128xf32, #tpu.memory_space<vmem>>, %arg2: memref<128x128xf32, #tpu.memory_space<vmem>>, %arg3: memref<1x128xf32, #tpu.memory_space<vmem>>, %arg4: memref<128x128xf32, #tpu.memory_space<vmem>>, %arg5: memref<1x128xf32, #tpu.memory_space<vmem>>, %arg6: memref<16x128xf32, #tpu.memory_space<vmem>>) attributes {dimension_semantics = [#tpu.dimension_semantics<parallel>], iteration_bounds = array<i64: 1>, scalar_prefetch = 0 : i64, scratch_operands = 0 : i64, tpu.core_type = #tpu.core_type<tc>, window_params = [{transform_indices = @transform_0, window_bounds = array<i64: 16, 128>}, {pipeline_mode = #tpu.pipeline_mode<synchronous>, transform_indices = @transform_1, window_bounds = array<i64: 128, 128>}, {pipeline_mode = #tpu.pipeline_mode<synchronous>, transform_indices = @transform_2, window_bounds = array<i64: 1, 128>}, {pipeline_mode = #tpu.pipeline_mode<synchronous>, transform_indices = @transform_3, window_bounds = array<i64: 128, 128>}, {pipeline_mode = #tpu.pipeline_mode<synchronous>, transform_indices = @transform_4, window_bounds = array<i64: 1, 128>}, {transform_indices = @transform_5, window_bounds = array<i64: 16, 128>}]} {
    %c0 = arith.constant 0 : index
    %c0_0 = arith.constant 0 : index
    %0 = vector.load %arg1[%c0, %c0_0] : memref<16x128xf32, #tpu.memory_space<vmem>>, vector<16x128xf32>
    %c0_1 = arith.constant 0 : index
    %c0_2 = arith.constant 0 : index
    %1 = vector.load %arg2[%c0_1, %c0_2] : memref<128x128xf32, #tpu.memory_space<vmem>>, vector<128x128xf32>
    %cst = arith.constant dense<0.000000e+00> : vector<16x128xf32>
    %2 = tpu.matmul %0, %1, %cst {dimension_numbers = #tpu.dot_dimension_numbers<[1], [0], [0], [1], [0, 0, 1, 1], [], []>} : vector<16x128xf32>, vector<128x128xf32>, vector<16x128xf32> -> vector<16x128xf32>
    %c0_3 = arith.constant 0 : index
    %c0_4 = arith.constant 0 : index
    %3 = vector.load %arg3[%c0_3, %c0_4] : memref<1x128xf32, #tpu.memory_space<vmem>>, vector<1x128xf32>
    %4 = vector.broadcast %3 : vector<1x128xf32> to vector<16x128xf32>
    %5 = arith.addf %2, %4 : vector<16x128xf32>
    %cst_5 = arith.constant 5.000000e-01 : f32
    %6 = vector.broadcast %cst_5 : f32 to vector<16x128xf32>
    %7 = arith.mulf %6, %5 : vector<16x128xf32>
    %cst_6 = arith.constant 0.707106769 : f32
    %8 = vector.broadcast %cst_6 : f32 to vector<16x128xf32>
    %9 = arith.mulf %5, %8 : vector<16x128xf32>
    %10 = math.erf %9 : vector<16x128xf32>
    %cst_7 = arith.constant 1.000000e+00 : f32
    %11 = vector.broadcast %cst_7 : f32 to vector<16x128xf32>
    %12 = arith.addf %11, %10 : vector<16x128xf32>
    %13 = arith.mulf %7, %12 : vector<16x128xf32>
    %c0_8 = arith.constant 0 : index
    %c0_9 = arith.constant 0 : index
    %14 = vector.load %arg4[%c0_8, %c0_9] : memref<128x128xf32, #tpu.memory_space<vmem>>, vector<128x128xf32>
    %cst_10 = arith.constant dense<0.000000e+00> : vector<16x128xf32>
    %15 = tpu.matmul %13, %14, %cst_10 {dimension_numbers = #tpu.dot_dimension_numbers<[1], [0], [0], [1], [0, 0, 1, 1], [], []>} : vector<16x128xf32>, vector<128x128xf32>, vector<16x128xf32> -> vector<16x128xf32>
    %c0_11 = arith.constant 0 : index
    %c0_12 = arith.constant 0 : index
    %16 = vector.load %arg5[%c0_11, %c0_12] : memref<1x128xf32, #tpu.memory_space<vmem>>, vector<1x128xf32>
    %17 = vector.broadcast %16 : vector<1x128xf32> to vector<16x128xf32>
    %18 = arith.addf %15, %17 : vector<16x128xf32>
    %19 = arith.addf %18, %0 : vector<16x128xf32>
    %c0_13 = arith.constant 0 : index
    %c0_14 = arith.constant 0 : index
    %20 = vector.load %arg6[%c0_13, %c0_14] : memref<16x128xf32, #tpu.memory_space<vmem>>, vector<16x128xf32>
    tpu.vector_store %arg6[%c0_13, %c0_14], %19 {strides = array<i32>} : memref<16x128xf32, #tpu.memory_space<vmem>>, vector<16x128xf32>,
    return
  }
  func.func @transform_0(%arg0: i32) -> (i32, i32) {
    %c0_i32 = arith.constant 0 : i32
    %c0_i32_0 = arith.constant 0 : i32
    return %arg0, %c0_i32 : i32, i32
  }
  func.func @transform_1(%arg0: i32) -> (i32, i32) {
    %c0_i32 = arith.constant 0 : i32
    %c0_i32_0 = arith.constant 0 : i32
    %c0_i32_1 = arith.constant 0 : i32
    return %c0_i32, %c0_i32_0 : i32, i32
  }
  func.func @transform_2(%arg0: i32) -> (i32, i32) {
    %c0_i32 = arith.constant 0 : i32
    %c0_i32_0 = arith.constant 0 : i32
    %c0_i32_1 = arith.constant 0 : i32
    return %c0_i32, %c0_i32_0 : i32, i32
  }
  func.func @transform_3(%arg0: i32) -> (i32, i32) {
    %c0_i32 = arith.constant 0 : i32
    %c0_i32_0 = arith.constant 0 : i32
    %c0_i32_1 = arith.constant 0 : i32
    return %c0_i32, %c0_i32_0 : i32, i32
  }
  func.func @transform_4(%arg0: i32) -> (i32, i32) {
    %c0_i32 = arith.constant 0 : i32
    %c0_i32_0 = arith.constant 0 : i32
    %c0_i32_1 = arith.constant 0 : i32
    return %c0_i32, %c0_i32_0 : i32, i32
  }
  func.func @transform_5(%arg0: i32) -> (i32, i32) {
    %c0_i32 = arith.constant 0 : i32
    %c0_i32_0 = arith.constant 0 : i32
    return %arg0, %c0_i32 : i32, i32
  }
}

module attributes {stable_mosaic.version = 11 : i64} {
  func.func @adapter_kernel(%arg0: i32, %arg1: memref<16x128xf32, #tpu.memory_space<vmem>>, %arg2: memref<128x128xf32, #tpu.memory_space<vmem>>, %arg3: memref<1x128xf32, #tpu.memory_space<vmem>>, %arg4: memref<128x128xf32, #tpu.memory_space<vmem>>, %arg5: memref<1x128xf32, #tpu.memory_space<vmem>>, %arg6: memref<16x128xf32, #tpu.memory_space<vmem>>) attributes {dimension_semantics = [#tpu.dimension_semantics<parallel>], iteration_bounds = array<i64: 1>, scalar_prefetch = 0 : i64, scratch_operands = 0 : i64, tpu.core_type = #tpu.core_type<tc>, window_params = [{transform_indices = @transform_0, window_bounds = array<i64: 16, 128>}, {pipeline_mode = #tpu.pipeline_mode<synchronous>, transform_indices = @transform_1, window_bounds = array<i64: 128, 128>}, {pipeline_mode = #tpu.pipeline_mode<synchronous>, transform_indices = @transform_2, window_bounds = array<i64: 1, 128>}, {pipeline_mode = #tpu.pipeline_mode<synchronous>, transform_indices = @transform_3, window_bounds = array<i64: 128, 128>}, {pipeline_mode = #tpu.pipeline_mode<synchronous>, transform_indices = @transform_4, window_bounds = array<i64: 1, 128>}, {transform_indices = @transform_5, window_bounds = array<i64: 16, 128>}]} {
    %c0 = arith.constant 0 : index
    %c0_0 = arith.constant 0 : index
    %0 = vector.load %arg1[%c0, %c0_0] : memref<16x128xf32, #tpu.memory_space<vmem>>, vector<16x128xf32>
    %c0_1 = arith.constant 0 : index
    %c0_2 = arith.constant 0 : index
    %1 = vector.load %arg2[%c0_1, %c0_2] : memref<128x128xf32, #tpu.memory_space<vmem>>, vector<128x128xf32>
    %cst = arith.constant dense<0.000000e+00> : vector<16x128xf32>
    %2 = tpu.matmul %0, %1, %cst {dimension_numbers = #tpu.dot_dimension_numbers<[1], [0], [0], [1], [0, 0, 1, 1], [], []>} : vector<16x128xf32>, vector<128x128xf32>, vector<16x128xf32> -> vector<16x128xf32>
    %c0_3 = arith.constant 0 : index
    %c0_4 = arith.constant 0 : index
    %3 = vector.load %arg3[%c0_3, %c0_4] : memref<1x128xf32, #tpu.memory_space<vmem>>, vector<1x128xf32>
    %4 = vector.broadcast %3 : vector<1x128xf32> to vector<16x128xf32>
    %5 = arith.addf %2, %4 : vector<16x128xf32>
    %cst_5 = arith.constant 5.000000e-01 : f32
    %6 = vector.broadcast %cst_5 : f32 to vector<16x128xf32>
    %7 = arith.mulf %6, %5 : vector<16x128xf32>
    %cst_6 = arith.constant 0.707106769 : f32
    %8 = vector.broadcast %cst_6 : f32 to vector<16x128xf32>
    %9 = arith.mulf %5, %8 : vector<16x128xf32>
    %10 = math.erf %9 : vector<16x128xf32>
    %cst_7 = arith.constant 1.000000e+00 : f32
    %11 = vector.broadcast %cst_7 : f32 to vector<16x128xf32>
    %12 = arith.addf %11, %10 : vector<16x128xf32>
    %13 = arith.mulf %7, %12 : vector<16x128xf32>
    %c0_8 = arith.constant 0 : index
    %c0_9 = arith.constant 0 : index
    %14 = vector.load %arg4[%c0_8, %c0_9] : memref<128x128xf32, #tpu.memory_space<vmem>>, vector<128x128xf32>
    %cst_10 = arith.constant dense<0.000000e+00> : vector<16x128xf32>
    %15 = tpu.matmul %13, %14, %cst_10 {dimension_numbers = #tpu.dot_dimension_numbers<[1], [0], [0], [1], [0, 0, 1, 1], [], []>} : vector<16x128xf32>, vector<128x128xf32>, vector<16x128xf32> -> vector<16x128xf32>
    %c0_11 = arith.constant 0 : index
    %c0_12 = arith.constant 0 : index
    %16 = vector.load %arg5[%c0_11, %c0_12] : memref<1x128xf32, #tpu.memory_space<vmem>>, vector<1x128xf32>
    %17 = vector.broadcast %16 : vector<1x128xf32> to vector<16x128xf32>
    %18 = arith.addf %15, %17 : vector<16x128xf32>
    %19 = arith.addf %18, %0 : vector<16x128xf32>
    %c0_13 = arith.constant 0 : index
    %c0_14 = arith.constant 0 : index
    %20 = vector.load %arg6[%c0_13, %c0_14] : memref<16x128xf32, #tpu.memory_space<vmem>>, vector<16x128xf32>
    tpu.vector_store %arg6[%c0_13, %c0_14], %19 {strides = array<i32>} : memref<16x128xf32, #tpu.memory_space<vmem>>, vector<16x128xf32>,
    return
  }
  func.func @transform_0(%arg0: i32) -> (i32, i32) {
    %c0_i32 = arith.constant 0 : i32
    %c0_i32_0 = arith.constant 0 : i32
    return %arg0, %c0_i32 : i32, i32
  }
  func.func @transform_1(%arg0: i32) -> (i32, i32) {
    %c0_i32 = arith.constant 0 : i32
    %c0_i32_0 = arith.constant 0 : i32
    %c0_i32_1 = arith.constant 0 : i32
    return %c0_i32, %c0_i32_0 : i32, i32
  }
  func.func @transform_2(%arg0: i32) -> (i32, i32) {
    %c0_i32 = arith.constant 0 : i32
    %c0_i32_0 = arith.constant 0 : i32
    %c0_i32_1 = arith.constant 0 : i32
    return %c0_i32, %c0_i32_0 : i32, i32
  }
  func.func @transform_3(%arg0: i32) -> (i32, i32) {
    %c0_i32 = arith.constant 0 : i32
    %c0_i32_0 = arith.constant 0 : i32
    %c0_i32_1 = arith.constant 0 : i32
    return %c0_i32, %c0_i32_0 : i32, i32
  }
  func.func @transform_4(%arg0: i32) -> (i32, i32) {
    %c0_i32 = arith.constant 0 : i32
    %c0_i32_0 = arith.constant 0 : i32
    %c0_i32_1 = arith.constant 0 : i32
    return %c0_i32, %c0_i32_0 : i32, i32
  }
  func.func @transform_5(%arg0: i32) -> (i32, i32) {
    %c0_i32 = arith.constant 0 : i32
    %c0_i32_0 = arith.constant 0 : i32
    return %arg0, %c0_i32 : i32, i32
  }
}

</mosaic_0001>

<bundles_post_ra>
// kernel: tpu_custom_call.1
= control target key start
LH: loop header
LB: loop body
LE: loop exit
PB: predicated region body
PF: predicated region fallthrough
CT: control target
= control target key end

     0   :  { %10 = vsyncpa [#allocation3], 0  ;;  %s681_s0 = inlined_call_operand.hbm [shape: f32[16,128], index: 0, kind: input, shape index: {}]   ;;  %s682_s1 = inlined_call_operand.hbm [shape: f32[128,128], index: 1, kind: input, shape index: {}]   ;;  %s683_s2 = inlined_call_operand.vmem [shape: f32[1,128], index: 2, kind: input, shape index: {}]   ;;  %s684_s3 = inlined_call_operand.hbm [shape: f32[128,128], index: 3, kind: input, shape index: {}]   ;;  %s685_s4 = inlined_call_operand.vmem [shape: f32[1,128], index: 4, kind: input, shape index: {}]   ;;  %s686_s5 = inlined_call_operand.hbm [shape: f32[16,128], index: 5, kind: output, shape index: {}]  }
   0x1   :  { %11 = vsyncpa [#allocation6], 0 }
   0x2   :  { %12 = vsyncpa [#allocation4], 0  ;;  %s568_s18 = smov [#allocation5]   ;;  %s569_s20 = smov [#allocation2]  }
   0x3   :  { %s30_s19 = sshll.u32 %s568_s18, 4  ;;  %s18_s21 = sshll.u32 %s569_s20, 4  ;;  %s31_s19 = int_to_ptr.vmem [resolvable:$true] %s30_s19  ;;  %s604_s21 = int_to_ptr.vmem [resolvable:$true] %s18_s21 }
   0x4   :  { %s474_s24 = scalar_lea.hbm %s682_s1, 2048 }
   0x5   :  { %p475_p0 = scmp.ne.s32.totalorder %s682_s1, %s474_s24  ;;  %p478_p1 = scmp.lt.u32.totalorder %s474_s24, %s682_s1 }
   0x7   :  { %p480_p2 = pnand %p478_p1, %p475_p0 }
   0x9   :  { %483 = shalt.err (!%p480_p2)
}
   0xa   :  { %s484_s29 = scalar_lea.vmem %s31_s19, 2048  ;;  %p489_p4 = scmp.lt.s32.totalorder %s31_s19, %s31_s19 }
   0xb   :  { %p485_p3 = scmp.ne.s32.totalorder %s31_s19, %s484_s29  ;;  %p490_p5 = scmp.lt.s32.totalorder %s484_s29, %s484_s29 }
   0xd   :  { %p491_p6 = por %p490_p5, %p489_p4 }
   0xf   :  { %p492_p7 = pnand %p491_p6, %p485_p3 }
  0x11   :  { %495 = shalt.err (!%p492_p7)
}
  0x12   :  { %s570_s30 = smov 128   ;;  %s571_s6 = smov 8  }
  0x13   :  { %36 = dma.hbm_to_vmem [thread:$0]  %s682_s1, 2048, %s31_s19, [#allocation6], %s570_s30, %s570_s30, %s571_s6  }
  0x14   :  { %s496_s11 = scalar_lea.hbm %s681_s0, 256 }
  0x15   :  { %p497_p8 = scmp.ne.s32.totalorder %s681_s0, %s496_s11  ;;  %p500_p9 = scmp.lt.u32.totalorder %s496_s11, %s681_s0 }
  0x17   :  { %p502_p10 = pnand %p500_p9, %p497_p8 }
  0x19   :  { %505 = shalt.err (!%p502_p10)
}
  0x1a   :  { %s506_s16 = scalar_lea.vmem %s604_s21, 256  ;;  %p511_p12 = scmp.lt.s32.totalorder %s604_s21, %s604_s21 }
  0x1b   :  { %p507_p11 = scmp.ne.s32.totalorder %s604_s21, %s506_s16  ;;  %p512_p13 = scmp.lt.s32.totalorder %s506_s16, %s506_s16 }
  0x1d   :  { %p513_p0 = por %p512_p13, %p511_p12 }
  0x1f   :  { %p514_p1 = pnand %p513_p0, %p507_p11 }
  0x21   :  { %517 = shalt.err (!%p514_p1)
}
  0x22   :  { %24 = dma.hbm_to_vmem [thread:$0]  %s681_s0, 256, %s604_s21, [#allocation3], %s570_s30, %s570_s30, %s571_s6  }
  0x23   :  { %s572_s18 = smov [#allocation7]   ;;  %s518_s23 = scalar_lea.hbm %s684_s3, 2048 }
  0x24   :  { %s44_s19 = sshll.u32 %s572_s18, 4  ;;  %p519_p2 = scmp.ne.s32.totalorder %s684_s3, %s518_s23  ;;  %s45_s19 = int_to_ptr.vmem [resolvable:$true] %s44_s19 }
  0x25   :  { %p522_p3 = scmp.lt.u32.totalorder %s518_s23, %s684_s3 }
  0x27   :  { %p524_p4 = pnand %p522_p3, %p519_p2 }
  0x29   :  { %527 = shalt.err (!%p524_p4)
}
  0x2a   :  { %s528_s28 = scalar_lea.vmem %s45_s19, 2048  ;;  %p533_p6 = scmp.lt.s32.totalorder %s45_s19, %s45_s19 }
  0x2b   :  { %p529_p5 = scmp.ne.s32.totalorder %s45_s19, %s528_s28  ;;  %p534_p7 = scmp.lt.s32.totalorder %s528_s28, %s528_s28 }
  0x2d   :  { %p535_p8 = por %p534_p7, %p533_p6 }
  0x2f   :  { %p536_p9 = pnand %p535_p8, %p529_p5 }
  0x31   :  { %539 = shalt.err (!%p536_p9)
}
  0x32   :  { %50 = dma.hbm_to_vmem [thread:$0]  %s684_s3, 2048, %s45_s19, [#allocation6], %s570_s30, %s570_s30, %s571_s6  }
  0x33   :  { %562 = dma.done.wait [#allocation3], 256  }
  0x34   :  { %563 = vsyncadd [#allocation3], 4294967040 }
  0x35   :  { %564 = dma.done.wait [#allocation6], 4096  }
  0x36   :  { %565 = vsyncadd [#allocation6], 4294963200  ;;  %v64_v0 = vld [vmem:[#allocation5] sm:$0xff]  ;;  %v65_v1 = vld [vmem:[#allocation5 + $0x8] sm:$0xff]  ;;  %s573_s8 = smov [#allocation8]  }
  0x37   :  { %v66_v2 = vld [vmem:[#allocation5 + $0x10] sm:$0xff]  ;;  %v400_v3 = vpack.c.bf16 %v65_v1, %v64_v0  ;;  %v67_v4 = vld [vmem:[#allocation5 + $0x18] sm:$0xff]  ;;  %v68_v6 = vld [vmem:[#allocation5 + $0x20] sm:$0xff]  ;;  %s279_s9 = sshll.u32 %s573_s8, 4  ;;  %s280_s9 = int_to_ptr.vmem [resolvable:$true] %s279_s9 }
  0x38   :  { %v404_v5 = vpack.c.bf16 %v67_v4, %v66_v2  ;;  %v69_v7 = vld [vmem:[#allocation5 + $0x28] sm:$0xff]  ;;  %v70_v9 = vld [vmem:[#allocation5 + $0x30] sm:$0xff]  ;;  %v71_v10 = vld [vmem:[#allocation5 + $0x38] sm:$0xff]  ;;  %s540_s10 = scalar_lea.vmem %s280_s9, 256  ;;  %p545_p11 = scmp.lt.s32.totalorder %s280_s9, %s280_s9 }
  0x39   :  { %401 = vmatprep.subr.bf16.mxu0 %v400_v3  ;;  %v408_v8 = vpack.c.bf16 %v69_v7, %v68_v6  ;;  %v656_v11 = vld [vmem:[#allocation2] sm:$0xff]  ;;  %v172_v12 = vld [vmem:[#allocation7] sm:$0xff]  ;;  %v173_v13 = vld [vmem:[#allocation7 + $0x8] sm:$0xff]  ;;  %v412_v20 = vpack.c.bf16 %v71_v10, %v70_v9  ;;  %p541_p10 = scmp.ne.s32.totalorder %s280_s9, %s540_s10  ;;  %p546_p12 = scmp.lt.s32.totalorder %s540_s10, %s540_s10 }
  0x3a   :  { %403 = vmatpush3.bf16.msra.mxu0 %v400_v3  ;;  %362 = vmatprep.mubr.f32.mxu0 %v656_v11  ;;  %v174_v14 = vld [vmem:[#allocation7 + $0x10] sm:$0xff]  ;;  %v432_v15 = vpack.c.bf16 %v173_v13, %v172_v12  ;;  %v175_v16 = vld [vmem:[#allocation7 + $0x18] sm:$0xff]  ;;  %v176_v18 = vld [vmem:[#allocation7 + $0x20] sm:$0xff] }
  0x3b   :  { %405 = vmatprep.subr.bf16.mxu0 %v404_v5  ;;  %v436_v17 = vpack.c.bf16 %v175_v16, %v174_v14  ;;  %v177_v19 = vld [vmem:[#allocation7 + $0x28] sm:$0xff]  ;;  %v72_v21 = vld [vmem:[#allocation5 + $0x40] sm:$0xff]  ;;  %v74_v25 = vld [vmem:[#allocation5 + $0x50] sm:$0xff]  ;;  %p547_p13 = por %p546_p12, %p545_p11 }
  0x3c   :  { %433 = vmatprep.subr.bf16.mxu1 %v432_v15  ;;  %v73_v22 = vld [vmem:[#allocation5 + $0x48] sm:$0xff]  ;;  %v440_v23 = vpack.c.bf16 %v177_v19, %v176_v18  ;;  %v75_v26 = vld [vmem:[#allocation5 + $0x58] sm:$0xff]  ;;  %v76_v28 = vld [vmem:[#allocation5 + $0x60] sm:$0xff] }
  0x3d   :  { %435 = vmatpush3.bf16.msra.mxu1 %v432_v15  ;;  %v416_v24 = vpack.c.bf16 %v73_v22, %v72_v21  ;;  %v420_v27 = vpack.c.bf16 %v75_v26, %v74_v25  ;;  %v77_v29 = vld [vmem:[#allocation5 + $0x68] sm:$0xff]  ;;  %v78_v31 = vld [vmem:[#allocation5 + $0x70] sm:$0xff]  ;;  %v79_v32 = vld [vmem:[#allocation5 + $0x78] sm:$0xff]  ;;  %p548_p0 = pnand %p547_p13, %p541_p10 }
  0x3e   :  { %407 = vmatpush3.bf16.msra.mxu0 %v404_v5  ;;  %437 = vmatprep.subr.bf16.mxu1 %v436_v17  ;;  %v424_v30 = vpack.c.bf16 %v77_v29, %v76_v28  ;;  %v428_v33 = vpack.c.bf16 %v79_v32, %v78_v31  ;;  %v63_v34 = vld [vmem:[#allocation2 + $0x8] sm:$0xff]  ;;  %v178_v35 = vld [vmem:[#allocation7 + $0x30] sm:$0xff]  ;;  %v180_v38 = vld [vmem:[#allocation7 + $0x40] sm:$0xff] }
  0x3f   :  { %409 = vmatprep.subr.bf16.mxu0 %v408_v8  ;;  %v179_v36 = vld [vmem:[#allocation7 + $0x38] sm:$0xff]  ;;  %v181_v39 = vld [vmem:[#allocation7 + $0x48] sm:$0xff]  ;;  %v182_v41 = vld [vmem:[#allocation7 + $0x50] sm:$0xff] }
  0x40   :  { %v444_v37 = vpack.c.bf16 %v179_v36, %v178_v35  ;;  %v448_v40 = vpack.c.bf16 %v181_v39, %v180_v38  ;;  %v183_v42 = vld [vmem:[#allocation7 + $0x58] sm:$0xff]  ;;  %v184_v44 = vld [vmem:[#allocation7 + $0x60] sm:$0xff]  ;;  %v185_v45 = vld [vmem:[#allocation7 + $0x68] sm:$0xff] }
  0x41   :  { %439 = vmatpush3.bf16.msra.mxu1 %v436_v17  ;;  %v452_v43 = vpack.c.bf16 %v183_v42, %v182_v41  ;;  %v456_v46 = vpack.c.bf16 %v185_v45, %v184_v44  ;;  %v186_v47 = vld [vmem:[#allocation7 + $0x70] sm:$0xff]  ;;  %v187_v48 = vld [vmem:[#allocation7 + $0x78] sm:$0xff] }
  0x42   :  { %411 = vmatpush3.bf16.msra.mxu0 %v408_v8  ;;  %441 = vmatprep.subr.bf16.mxu1 %v440_v23  ;;  %v460_v49 = vpack.c.bf16 %v187_v48, %v186_v47  ;;  %v292_v50 = vld [vmem:[%s683_s2] ss:$0 sm:$0xff] }
  0x43   :  { %413 = vmatprep.subr.bf16.mxu0 %v412_v20  ;;  %v293_v1 = vld [vmem:[%s685_s4] ss:$0 sm:$0xff] }
  0x45   :  { %443 = vmatpush3.bf16.msra.mxu1 %v440_v23 }
  0x46   :  { %415 = vmatpush3.bf16.msra.mxu0 %v412_v20  ;;  %445 = vmatprep.subr.bf16.mxu1 %v444_v37 }
  0x47   :  { %417 = vmatprep.subr.bf16.mxu0 %v416_v24 }
  0x49   :  { %447 = vmatpush3.bf16.msra.mxu1 %v444_v37 }
  0x4a   :  { %419 = vmatpush3.bf16.msra.mxu0 %v416_v24  ;;  %449 = vmatprep.subr.bf16.mxu1 %v448_v40 }
  0x4b   :  { %421 = vmatprep.subr.bf16.mxu0 %v420_v27 }
  0x4d   :  { %451 = vmatpush3.bf16.msra.mxu1 %v448_v40 }
  0x4e   :  { %423 = vmatpush3.bf16.msra.mxu0 %v420_v27  ;;  %453 = vmatprep.subr.bf16.mxu1 %v452_v43 }
  0x4f   :  { %425 = vmatprep.subr.bf16.mxu0 %v424_v30 }
  0x51   :  { %455 = vmatpush3.bf16.msra.mxu1 %v452_v43 }
  0x52   :  { %427 = vmatpush3.bf16.msra.mxu0 %v424_v30  ;;  %457 = vmatprep.subr.bf16.mxu1 %v456_v46 }
  0x53   :  { %429 = vmatprep.subr.bf16.mxu0 %v428_v33 }
  0x55   :  { %459 = vmatpush3.bf16.msra.mxu1 %v456_v46 }
  0x56   :  { %431 = vmatpush3.bf16.msra.mxu0 %v428_v33  ;;  %461 = vmatprep.subr.bf16.mxu1 %v460_v49 }
  0x59   :  { %363 = vmatmul.mubr.f32.vlgmr.msra.gmra.mrb[0].mxu0 %v63_v34  ;;  %463 = vmatpush3.bf16.msra.mxu1 %v460_v49 }
 0x12c   :  { %v364_v51 = vpop.f32.mrb[0].mxu0 }
 0x12d   :  { %v159_v52 = vadd.f32 %v364_v51, %v292_v50  ;;  %v153_v53 = vpop.f32.mrb[1].mxu0 }
 0x12e   :  { %v154_v54 = vadd.f32 %v292_v50, %v153_v53 }
 0x12f   :  { %v165_v55 = vmul.f32 0.70710677, %v159_v52  ;;  %v163_v62 = vmul.f32 0.5, %v159_v52 }
 0x130   :  { %v164_v56 = vmul.f32 0.70710677, %v154_v54  ;;  %v162_v60 = vmul.f32 0.5, %v154_v54 }
 0x131   :  { %470 = verf.f32 %v165_v55 }
 0x132   :  { %472 = verf.f32 %v164_v56 }
 0x13b   :  { %v471_v57 = vpop.eup %470 }
 0x13c   :  { %v473_v58 = vpop.eup %472  ;;  %v169_v59 = vadd.f32 1.0, %v471_v57 }
 0x13d   :  { %v168_v61 = vadd.f32 1.0, %v473_v58 }
 0x13e   :  { %v171_v0 = vmul.f32 %v169_v59, %v163_v62 }
 0x13f   :  { %v170_v63 = vmul.f32 %v168_v61, %v162_v60 }
 0x141   :  { %397 = vmatprep.mubr.f32.mxu1 %v170_v63 }
 0x142   :  { %398 = vmatmul.mubr.f32.vlgmr.msra.gmra.mrb[0].mxu1 %v171_v0 }
 0x215   :  { %v399_v2 = vpop.f32.mrb[0].mxu1 }
 0x216   :  { %v267_v3 = vadd.f32 %v399_v2, %v293_v1  ;;  %v261_v4 = vpop.f32.mrb[1].mxu1 }
 0x217   :  { %v262_v5 = vadd.f32 %v293_v1, %v261_v4 }
 0x218   :  { %v271_v6 = vadd.f32 %v267_v3, %v63_v34 }
 0x219   :  { %v270_v7 = vadd.f32 %v262_v5, %v656_v11 }
 0x21a   :  { %273 = vst [vmem:[#allocation8 + $0x8] sm:$0xff] %v271_v6 }
 0x21b   :  { %272 = vst [vmem:[#allocation8] sm:$0xff] %v270_v7 }
 0x21c   :  { %551 = shalt.err (!%p548_p0)
}
 0x21d   :  { %s552_s12 = scalar_lea.hbm %s686_s5, 256 }
 0x21e   :  { %p553_p1 = scmp.ne.s32.totalorder %s686_s5, %s552_s12  ;;  %p556_p2 = scmp.lt.u32.totalorder %s552_s12, %s686_s5 }
 0x220   :  { %p558_p3 = pnand %p556_p2, %p553_p1 }
 0x222   :  { %561 = shalt.err (!%p558_p3)
}
 0x223   :  { %285 = dma.vmem_to_hbm [thread:$0]  %s280_s9, 256, %s686_s5, [#allocation4], %s570_s30, %s570_s30, %s571_s6  }
 0x224   :  { %566 = dma.done.wait [#allocation4], 256  }
 0x225   :  { %567 = vsyncadd [#allocation4], 4294967040 }
 0x226   :  { %289 = vsyncpa [#allocation3], 1 }
 0x227   :  { %290 = vsyncpa [#allocation6], 1 }
 0x228   :  { %291 = vsyncpa [#allocation4], 1 }

// kernel: tpu_custom_call.1
= control target key start
LH: loop header
LB: loop body
LE: loop exit
PB: predicated region body
PF: predicated region fallthrough
CT: control target
= control target key end

     0   :  { %10 = vsyncpa [#allocation3], 0  ;;  %s681_s0 = inlined_call_operand.hbm [shape: f32[16,128], index: 0, kind: input, shape index: {}]   ;;  %s682_s1 = inlined_call_operand.hbm [shape: f32[128,128], index: 1, kind: input, shape index: {}]   ;;  %s683_s2 = inlined_call_operand.vmem [shape: f32[1,128], index: 2, kind: input, shape index: {}]   ;;  %s684_s3 = inlined_call_operand.hbm [shape: f32[128,128], index: 3, kind: input, shape index: {}]   ;;  %s685_s4 = inlined_call_operand.vmem [shape: f32[1,128], index: 4, kind: input, shape index: {}]   ;;  %s686_s5 = inlined_call_operand.hbm [shape: f32[16,128], index: 5, kind: output, shape index: {}]  }
   0x1   :  { %11 = vsyncpa [#allocation6], 0 }
   0x2   :  { %12 = vsyncpa [#allocation4], 0  ;;  %s568_s18 = smov [#allocation5]   ;;  %s569_s20 = smov [#allocation2]  }
   0x3   :  { %s30_s19 = sshll.u32 %s568_s18, 4  ;;  %s18_s21 = sshll.u32 %s569_s20, 4  ;;  %s31_s19 = int_to_ptr.vmem [resolvable:$true] %s30_s19  ;;  %s604_s21 = int_to_ptr.vmem [resolvable:$true] %s18_s21 }
   0x4   :  { %s474_s24 = scalar_lea.hbm %s682_s1, 2048 }
   0x5   :  { %p475_p0 = scmp.ne.s32.totalorder %s682_s1, %s474_s24  ;;  %p478_p1 = scmp.lt.u32.totalorder %s474_s24, %s682_s1 }
   0x7   :  { %p480_p2 = pnand %p478_p1, %p475_p0 }
   0x9   :  { %483 = shalt.err (!%p480_p2)
}
   0xa   :  { %s484_s29 = scalar_lea.vmem %s31_s19, 2048  ;;  %p489_p4 = scmp.lt.s32.totalorder %s31_s19, %s31_s19 }
   0xb   :  { %p485_p3 = scmp.ne.s32.totalorder %s31_s19, %s484_s29  ;;  %p490_p5 = scmp.lt.s32.totalorder %s484_s29, %s484_s29 }
   0xd   :  { %p491_p6 = por %p490_p5, %p489_p4 }
   0xf   :  { %p492_p7 = pnand %p491_p6, %p485_p3 }
  0x11   :  { %495 = shalt.err (!%p492_p7)
}
  0x12   :  { %s570_s30 = smov 128   ;;  %s571_s6 = smov 8  }
  0x13   :  { %36 = dma.hbm_to_vmem [thread:$0]  %s682_s1, 2048, %s31_s19, [#allocation6], %s570_s30, %s570_s30, %s571_s6  }
  0x14   :  { %s496_s11 = scalar_lea.hbm %s681_s0, 256 }
  0x15   :  { %p497_p8 = scmp.ne.s32.totalorder %s681_s0, %s496_s11  ;;  %p500_p9 = scmp.lt.u32.totalorder %s496_s11, %s681_s0 }
  0x17   :  { %p502_p10 = pnand %p500_p9, %p497_p8 }
  0x19   :  { %505 = shalt.err (!%p502_p10)
}
  0x1a   :  { %s506_s16 = scalar_lea.vmem %s604_s21, 256  ;;  %p511_p12 = scmp.lt.s32.totalorder %s604_s21, %s604_s21 }
  0x1b   :  { %p507_p11 = scmp.ne.s32.totalorder %s604_s21, %s506_s16  ;;  %p512_p13 = scmp.lt.s32.totalorder %s506_s16, %s506_s16 }
  0x1d   :  { %p513_p0 = por %p512_p13, %p511_p12 }
  0x1f   :  { %p514_p1 = pnand %p513_p0, %p507_p11 }
  0x21   :  { %517 = shalt.err (!%p514_p1)
}
  0x22   :  { %24 = dma.hbm_to_vmem [thread:$0]  %s681_s0, 256, %s604_s21, [#allocation3], %s570_s30, %s570_s30, %s571_s6  }
  0x23   :  { %s572_s18 = smov [#allocation7]   ;;  %s518_s23 = scalar_lea.hbm %s684_s3, 2048 }
  0x24   :  { %s44_s19 = sshll.u32 %s572_s18, 4  ;;  %p519_p2 = scmp.ne.s32.totalorder %s684_s3, %s518_s23  ;;  %s45_s19 = int_to_ptr.vmem [resolvable:$true] %s44_s19 }
  0x25   :  { %p522_p3 = scmp.lt.u32.totalorder %s518_s23, %s684_s3 }
  0x27   :  { %p524_p4 = pnand %p522_p3, %p519_p2 }
  0x29   :  { %527 = shalt.err (!%p524_p4)
}
  0x2a   :  { %s528_s28 = scalar_lea.vmem %s45_s19, 2048  ;;  %p533_p6 = scmp.lt.s32.totalorder %s45_s19, %s45_s19 }
  0x2b   :  { %p529_p5 = scmp.ne.s32.totalorder %s45_s19, %s528_s28  ;;  %p534_p7 = scmp.lt.s32.totalorder %s528_s28, %s528_s28 }
  0x2d   :  { %p535_p8 = por %p534_p7, %p533_p6 }
  0x2f   :  { %p536_p9 = pnand %p535_p8, %p529_p5 }
  0x31   :  { %539 = shalt.err (!%p536_p9)
}
  0x32   :  { %50 = dma.hbm_to_vmem [thread:$0]  %s684_s3, 2048, %s45_s19, [#allocation6], %s570_s30, %s570_s30, %s571_s6  }
  0x33   :  { %562 = dma.done.wait [#allocation3], 256  }
  0x34   :  { %563 = vsyncadd [#allocation3], 4294967040 }
  0x35   :  { %564 = dma.done.wait [#allocation6], 4096  }
  0x36   :  { %565 = vsyncadd [#allocation6], 4294963200  ;;  %v64_v0 = vld [vmem:[#allocation5] sm:$0xff]  ;;  %v65_v1 = vld [vmem:[#allocation5 + $0x8] sm:$0xff]  ;;  %s573_s8 = smov [#allocation8]  }
  0x37   :  { %v66_v2 = vld [vmem:[#allocation5 + $0x10] sm:$0xff]  ;;  %v400_v3 = vpack.c.bf16 %v65_v1, %v64_v0  ;;  %v67_v4 = vld [vmem:[#allocation5 + $0x18] sm:$0xff]  ;;  %v68_v6 = vld [vmem:[#allocation5 + $0x20] sm:$0xff]  ;;  %s279_s9 = sshll.u32 %s573_s8, 4  ;;  %s280_s9 = int_to_ptr.vmem [resolvable:$true] %s279_s9 }
  0x38   :  { %v404_v5 = vpack.c.bf16 %v67_v4, %v66_v2  ;;  %v69_v7 = vld [vmem:[#allocation5 + $0x28] sm:$0xff]  ;;  %v70_v9 = vld [vmem:[#allocation5 + $0x30] sm:$0xff]  ;;  %v71_v10 = vld [vmem:[#allocation5 + $0x38] sm:$0xff]  ;;  %s540_s10 = scalar_lea.vmem %s280_s9, 256  ;;  %p545_p11 = scmp.lt.s32.totalorder %s280_s9, %s280_s9 }
  0x39   :  { %401 = vmatprep.subr.bf16.mxu0 %v400_v3  ;;  %v408_v8 = vpack.c.bf16 %v69_v7, %v68_v6  ;;  %v656_v11 = vld [vmem:[#allocation2] sm:$0xff]  ;;  %v172_v12 = vld [vmem:[#allocation7] sm:$0xff]  ;;  %v173_v13 = vld [vmem:[#allocation7 + $0x8] sm:$0xff]  ;;  %v412_v20 = vpack.c.bf16 %v71_v10, %v70_v9  ;;  %p541_p10 = scmp.ne.s32.totalorder %s280_s9, %s540_s10  ;;  %p546_p12 = scmp.lt.s32.totalorder %s540_s10, %s540_s10 }
  0x3a   :  { %403 = vmatpush3.bf16.msra.mxu0 %v400_v3  ;;  %362 = vmatprep.mubr.f32.mxu0 %v656_v11  ;;  %v174_v14 = vld [vmem:[#allocation7 + $0x10] sm:$0xff]  ;;  %v432_v15 = vpack.c.bf16 %v173_v13, %v172_v12  ;;  %v175_v16 = vld [vmem:[#allocation7 + $0x18] sm:$0xff]  ;;  %v176_v18 = vld [vmem:[#allocation7 + $0x20] sm:$0xff] }
  0x3b   :  { %405 = vmatprep.subr.bf16.mxu0 %v404_v5  ;;  %v436_v17 = vpack.c.bf16 %v175_v16, %v174_v14  ;;  %v177_v19 = vld [vmem:[#allocation7 + $0x28] sm:$0xff]  ;;  %v72_v21 = vld [vmem:[#allocation5 + $0x40] sm:$0xff]  ;;  %v74_v25 = vld [vmem:[#allocation5 + $0x50] sm:$0xff]  ;;  %p547_p13 = por %p546_p12, %p545_p11 }
  0x3c   :  { %433 = vmatprep.subr.bf16.mxu1 %v432_v15  ;;  %v73_v22 = vld [vmem:[#allocation5 + $0x48] sm:$0xff]  ;;  %v440_v23 = vpack.c.bf16 %v177_v19, %v176_v18  ;;  %v75_v26 = vld [vmem:[#allocation5 + $0x58] sm:$0xff]  ;;  %v76_v28 = vld [vmem:[#allocation5 + $0x60] sm:$0xff] }
  0x3d   :  { %435 = vmatpush3.bf16.msra.mxu1 %v432_v15  ;;  %v416_v24 = vpack.c.bf16 %v73_v22, %v72_v21  ;;  %v420_v27 = vpack.c.bf16 %v75_v26, %v74_v25  ;;  %v77_v29 = vld [vmem:[#allocation5 + $0x68] sm:$0xff]  ;;  %v78_v31 = vld [vmem:[#allocation5 + $0x70] sm:$0xff]  ;;  %v79_v32 = vld [vmem:[#allocation5 + $0x78] sm:$0xff]  ;;  %p548_p0 = pnand %p547_p13, %p541_p10 }
  0x3e   :  { %407 = vmatpush3.bf16.msra.mxu0 %v404_v5  ;;  %437 = vmatprep.subr.bf16.mxu1 %v436_v17  ;;  %v424_v30 = vpack.c.bf16 %v77_v29, %v76_v28  ;;  %v428_v33 = vpack.c.bf16 %v79_v32, %v78_v31  ;;  %v63_v34 = vld [vmem:[#allocation2 + $0x8] sm:$0xff]  ;;  %v178_v35 = vld [vmem:[#allocation7 + $0x30] sm:$0xff]  ;;  %v180_v38 = vld [vmem:[#allocation7 + $0x40] sm:$0xff] }
  0x3f   :  { %409 = vmatprep.subr.bf16.mxu0 %v408_v8  ;;  %v179_v36 = vld [vmem:[#allocation7 + $0x38] sm:$0xff]  ;;  %v181_v39 = vld [vmem:[#allocation7 + $0x48] sm:$0xff]  ;;  %v182_v41 = vld [vmem:[#allocation7 + $0x50] sm:$0xff] }
  0x40   :  { %v444_v37 = vpack.c.bf16 %v179_v36, %v178_v35  ;;  %v448_v40 = vpack.c.bf16 %v181_v39, %v180_v38  ;;  %v183_v42 = vld [vmem:[#allocation7 + $0x58] sm:$0xff]  ;;  %v184_v44 = vld [vmem:[#allocation7 + $0x60] sm:$0xff]  ;;  %v185_v45 = vld [vmem:[#allocation7 + $0x68] sm:$0xff] }
  0x41   :  { %439 = vmatpush3.bf16.msra.mxu1 %v436_v17  ;;  %v452_v43 = vpack.c.bf16 %v183_v42, %v182_v41  ;;  %v456_v46 = vpack.c.bf16 %v185_v45, %v184_v44  ;;  %v186_v47 = vld [vmem:[#allocation7 + $0x70] sm:$0xff]  ;;  %v187_v48 = vld [vmem:[#allocation7 + $0x78] sm:$0xff] }
  0x42   :  { %411 = vmatpush3.bf16.msra.mxu0 %v408_v8  ;;  %441 = vmatprep.subr.bf16.mxu1 %v440_v23  ;;  %v460_v49 = vpack.c.bf16 %v187_v48, %v186_v47  ;;  %v292_v50 = vld [vmem:[%s683_s2] ss:$0 sm:$0xff] }
  0x43   :  { %413 = vmatprep.subr.bf16.mxu0 %v412_v20  ;;  %v293_v1 = vld [vmem:[%s685_s4] ss:$0 sm:$0xff] }
  0x45   :  { %443 = vmatpush3.bf16.msra.mxu1 %v440_v23 }
  0x46   :  { %415 = vmatpush3.bf16.msra.mxu0 %v412_v20  ;;  %445 = vmatprep.subr.bf16.mxu1 %v444_v37 }
  0x47   :  { %417 = vmatprep.subr.bf16.mxu0 %v416_v24 }
  0x49   :  { %447 = vmatpush3.bf16.msra.mxu1 %v444_v37 }
  0x4a   :  { %419 = vmatpush3.bf16.msra.mxu0 %v416_v24  ;;  %449 = vmatprep.subr.bf16.mxu1 %v448_v40 }
  0x4b   :  { %421 = vmatprep.subr.bf16.mxu0 %v420_v27 }
  0x4d   :  { %451 = vmatpush3.bf16.msra.mxu1 %v448_v40 }
  0x4e   :  { %423 = vmatpush3.bf16.msra.mxu0 %v420_v27  ;;  %453 = vmatprep.subr.bf16.mxu1 %v452_v43 }
  0x4f   :  { %425 = vmatprep.subr.bf16.mxu0 %v424_v30 }
  0x51   :  { %455 = vmatpush3.bf16.msra.mxu1 %v452_v43 }
  0x52   :  { %427 = vmatpush3.bf16.msra.mxu0 %v424_v30  ;;  %457 = vmatprep.subr.bf16.mxu1 %v456_v46 }
  0x53   :  { %429 = vmatprep.subr.bf16.mxu0 %v428_v33 }
  0x55   :  { %459 = vmatpush3.bf16.msra.mxu1 %v456_v46 }
  0x56   :  { %431 = vmatpush3.bf16.msra.mxu0 %v428_v33  ;;  %461 = vmatprep.subr.bf16.mxu1 %v460_v49 }
  0x59   :  { %363 = vmatmul.mubr.f32.vlgmr.msra.gmra.mrb[0].mxu0 %v63_v34  ;;  %463 = vmatpush3.bf16.msra.mxu1 %v460_v49 }
 0x12c   :  { %v364_v51 = vpop.f32.mrb[0].mxu0 }
 0x12d   :  { %v159_v52 = vadd.f32 %v364_v51, %v292_v50  ;;  %v153_v53 = vpop.f32.mrb[1].mxu0 }
 0x12e   :  { %v154_v54 = vadd.f32 %v292_v50, %v153_v53 }
 0x12f   :  { %v165_v55 = vmul.f32 0.70710677, %v159_v52  ;;  %v163_v62 = vmul.f32 0.5, %v159_v52 }
 0x130   :  { %v164_v56 = vmul.f32 0.70710677, %v154_v54  ;;  %v162_v60 = vmul.f32 0.5, %v154_v54 }
 0x131   :  { %470 = verf.f32 %v165_v55 }
 0x132   :  { %472 = verf.f32 %v164_v56 }
 0x13b   :  { %v471_v57 = vpop.eup %470 }
 0x13c   :  { %v473_v58 = vpop.eup %472  ;;  %v169_v59 = vadd.f32 1.0, %v471_v57 }
 0x13d   :  { %v168_v61 = vadd.f32 1.0, %v473_v58 }
 0x13e   :  { %v171_v0 = vmul.f32 %v169_v59, %v163_v62 }
 0x13f   :  { %v170_v63 = vmul.f32 %v168_v61, %v162_v60 }
 0x141   :  { %397 = vmatprep.mubr.f32.mxu1 %v170_v63 }
 0x142   :  { %398 = vmatmul.mubr.f32.vlgmr.msra.gmra.mrb[0].mxu1 %v171_v0 }
 0x215   :  { %v399_v2 = vpop.f32.mrb[0].mxu1 }
 0x216   :  { %v267_v3 = vadd.f32 %v399_v2, %v293_v1  ;;  %v261_v4 = vpop.f32.mrb[1].mxu1 }
 0x217   :  { %v262_v5 = vadd.f32 %v293_v1, %v261_v4 }
 0x218   :  { %v271_v6 = vadd.f32 %v267_v3, %v63_v34 }
 0x219   :  { %v270_v7 = vadd.f32 %v262_v5, %v656_v11 }
 0x21a   :  { %273 = vst [vmem:[#allocation8 + $0x8] sm:$0xff] %v271_v6 }
 0x21b   :  { %272 = vst [vmem:[#allocation8] sm:$0xff] %v270_v7 }
 0x21c   :  { %551 = shalt.err (!%p548_p0)
}
 0x21d   :  { %s552_s12 = scalar_lea.hbm %s686_s5, 256 }
 0x21e   :  { %p553_p1 = scmp.ne.s32.totalorder %s686_s5, %s552_s12  ;;  %p556_p2 = scmp.lt.u32.totalorder %s552_s12, %s686_s5 }
 0x220   :  { %p558_p3 = pnand %p556_p2, %p553_p1 }
 0x222   :  { %561 = shalt.err (!%p558_p3)
}
 0x223   :  { %285 = dma.vmem_to_hbm [thread:$0]  %s280_s9, 256, %s686_s5, [#allocation4], %s570_s30, %s570_s30, %s571_s6  }
 0x224   :  { %566 = dma.done.wait [#allocation4], 256  }
 0x225   :  { %567 = vsyncadd [#allocation4], 4294967040 }
 0x226   :  { %289 = vsyncpa [#allocation3], 1 }
 0x227   :  { %290 = vsyncpa [#allocation6], 1 }
 0x228   :  { %291 = vsyncpa [#allocation4], 1 }

</bundles_post_ra>
